<compile_context>
chip_gen: v5e
topology: v5e:2x2
jax: 0.10.0
libtpu: 0.0.40
codegen_flags: <defaults>
</compile_context>

<pallas_src>
import functools

import jax
import jax.numpy as jnp
from jax.experimental import pallas as pl
from jax.experimental.pallas import tpu as pltpu

_NEG_SENTINEL = -1e9   # matches the reference's masked-fill value
_BIG = 1e9             # "-inf" sentinel for the masked running max of sim
_EPS = 1e-6            # F.normalize(..., eps=1e-06) in the reference


def _round_up(x, m):
    return (x + m - 1) // m * m


def _pick_tile(n, cap, step):
    """Largest multiple of `step` that divides `n` and is <= cap."""
    c = (min(cap, n) // step) * step
    while c > step:
        if n % c == 0:
            return c
        c -= step
    return step


def _hardest_neg_kernel(og_ref, ogT_ref, inva_ref, invn_ref, bias_ref,
                        labc_ref, labr_ref, dap_ref, mv_ref, acc_ref, *,
                        margin):
    """Grid (i, j): anchor tile i (parallel) x negative tile j (arbitrary).

    Keeps a running elementwise max of the masked, column-scaled raw dot
    product in acc_ref (TM, TN).  At the last j it reduces across lanes once,
    applies the anchor inverse norm, converts to cosine distance and emits the
    per-anchor max violation column mv = d_ap - min_valid d_an + margin
    (or the -1e9 sentinel if the anchor has no valid negative).
    """
    j = pl.program_id(1)
    n_j = pl.num_programs(1)

    @pl.when(j == 0)
    def _():
        acc_ref[...] = jnp.full(acc_ref.shape, -_BIG, jnp.float32)

    # Raw bf16 MXU matmul with f32 accumulation (features are NOT normalized).
    raw = jnp.dot(og_ref[...], ogT_ref[...],
                  preferred_element_type=jnp.float32)            # (TM, TN)
    # Scale by 1/||negative|| ; padded columns get a -1e9 additive bias.
    sim = raw * invn_ref[...] + bias_ref[...]
    # Valid negative <=> labels differ (this also removes the diagonal).
    masked = jnp.where(labc_ref[...] != labr_ref[...], sim, -_BIG)
    acc_ref[...] = jnp.maximum(acc_ref[...], masked)             # pure VPU

    @pl.when(j == n_j - 1)
    def _():
        # Single cross-lane (XLU) reduce per anchor tile.
        max_pre = jnp.max(acc_ref[...], axis=1, keepdims=True)   # (TM, 1)
        has_valid = max_pre > (-0.5 * _BIG)
        max_sim = max_pre * inva_ref[...]                        # * 1/||anchor||
        d_an_min = jnp.clip(1.0 - max_sim, 0.0, 2.0)
        mv = dap_ref[...] - d_an_min + margin
        mv_ref[...] = jnp.where(has_valid, mv, _NEG_SENTINEL)


def _reduce_loss(mv, reducers, beta):
    """Hinge-select + reducer on the per-anchor max violation (plain jnp)."""
    valid = mv > 0.0
    count = jnp.sum(valid.astype(jnp.float32))
    selected = jnp.where(valid, mv, 0.0)
    if reducers == 'mean':
        return jnp.sum(selected) / (count + 1e-7)
    if reducers == 'sum':
        return jnp.sum(selected)
    if reducers == 'softmax':
        # (1/beta) * log(mean(exp(beta * l))) over selected terms; 0 if none.
        exps = jnp.where(valid, jnp.exp(beta * mv), 0.0)
        mean_exp = jnp.sum(exps) / jnp.maximum(count, 1.0)
        return jnp.where(count > 0.0,
                         jnp.log(jnp.maximum(mean_exp, 1e-30)) / beta,
                         jnp.float32(0.0))
    raise ValueError(f'Unknown reducer: {reducers}')


def adaptive_sentence_triplet(og_feat, ag_feat, labels, margin=0.5,
                              reducers='mean', beta=5.0,
                              mm_dtype=jnp.bfloat16):
    """Pallas TPU forward pass of AdaptiveSentenceTriplet.

    og_feat: (B, D) anchor features
    ag_feat: (B, D) positive features
    labels:  (B,)   integer batch labels
    Returns a scalar float32 loss.
    """
    B, D = og_feat.shape
    og32 = og_feat.astype(jnp.float32)
    ag32 = ag_feat.astype(jnp.float32)

    # --- cheap O(B*D) precompute (fused by XLA) ------------------------------
    inv_og = 1.0 / jnp.maximum(jnp.sqrt(jnp.sum(og32 * og32, axis=1)), _EPS)
    inv_ag = 1.0 / jnp.maximum(jnp.sqrt(jnp.sum(ag32 * ag32, axis=1)), _EPS)
    d_ap = jnp.clip(1.0 - jnp.sum(og32 * ag32, axis=1) * inv_og * inv_ag,
                    0.0, 2.0)                                     # (B,) f32

    # --- tile selection ------------------------------------------------------
    B_pad = _round_up(B, 128)
    TN = _pick_tile(B_pad, 512, 128)          # lane dim of the negative tile
    TM = _pick_tile(B_pad, 512, 8)            # sublane dim of the anchor tile
    if B_pad >= 256 and B_pad // TM < 2:
        TM = _pick_tile(B_pad, B_pad // 2, 8)  # >=2 anchor tiles -> v7x megacore
    D_pad = _round_up(D, 256)                  # 256-wide MXU on v6e/v7x
    # TODO(synk): for very large D (>~4k) block the contraction dim as well
    # (with a (TM,TN) accumulator) instead of streaming full-D tiles.

    grid = (B_pad // TM, B_pad // TN)

    # --- pad / layout --------------------------------------------------------
    og_p = jnp.pad(og32, ((0, B_pad - B), (0, D_pad - D))).astype(mm_dtype)
    og_t = og_p.T                                   # (D_pad, B_pad) pre-transposed
    lab = jnp.pad(labels.astype(jnp.int32), (0, B_pad - B))
    lab_col = lab.reshape(B_pad, 1)
    lab_row = lab.reshape(1, B_pad)
    inva_col = jnp.pad(inv_og, (0, B_pad - B),
                       constant_values=1.0).reshape(B_pad, 1)
    invn_row = jnp.pad(inv_og, (0, B_pad - B)).reshape(1, B_pad)
    # 0 for real columns, -1e9 for padded columns (never a valid negative).
    col_bias = jnp.pad(jnp.zeros((B,), jnp.float32), (0, B_pad - B),
                       constant_values=-_BIG).reshape(1, B_pad)
    dap_col = jnp.pad(d_ap, (0, B_pad - B)).reshape(B_pad, 1)

    # --- VMEM budget (double-buffered streamed tiles + (TM,TN) scratch) ------
    itemsize = jnp.dtype(mm_dtype).itemsize
    streamed = 2 * (TM * D_pad + D_pad * TN) * itemsize
    vmem_limit = int(min(max(2 * (streamed + TM * TN * 4) + (4 << 20),
                             32 << 20), 60 << 20))

    hardest = pl.pallas_call(
        functools.partial(_hardest_neg_kernel, margin=float(margin)),
        out_shape=jax.ShapeDtypeStruct((B_pad, 1), jnp.float32),
        grid_spec=pltpu.PrefetchScalarGridSpec(
            num_scalar_prefetch=0,
            grid=grid,
            in_specs=[
                pl.BlockSpec((TM, D_pad), lambda i, j: (i, 0)),   # anchors (bf16)
                pl.BlockSpec((D_pad, TN), lambda i, j: (0, j)),   # negatives, pre-T
                pl.BlockSpec((TM, 1), lambda i, j: (i, 0)),       # 1/||anchor||
                pl.BlockSpec((1, TN), lambda i, j: (0, j)),       # 1/||negative||
                pl.BlockSpec((1, TN), lambda i, j: (0, j)),       # padded-col bias
                pl.BlockSpec((TM, 1), lambda i, j: (i, 0)),       # anchor labels
                pl.BlockSpec((1, TN), lambda i, j: (0, j)),       # negative labels
                pl.BlockSpec((TM, 1), lambda i, j: (i, 0)),       # d_ap
            ],
            out_specs=pl.BlockSpec((TM, 1), lambda i, j: (i, 0)),
            scratch_shapes=[pltpu.VMEM((TM, TN), jnp.float32)],   # running max sim
        ),
        compiler_params=pltpu.CompilerParams(
            dimension_semantics=("parallel", "arbitrary"),
            vmem_limit_bytes=vmem_limit),
    )(og_p, og_t, inva_col, invn_row, col_bias, lab_col, lab_row, dap_col)

    # Padded anchor rows are simply sliced away; final O(B) reduction in XLA.
    return _reduce_loss(hardest[:B, 0], reducers, float(beta))


if __name__ == "__main__":
    key = jax.random.PRNGKey(0)
    k_og, k_ag, k_lab = jax.random.split(key, 3)

    B, D = 8, 32
    og_feat = jax.random.normal(k_og, (B, D), dtype=jnp.float32)
    ag_feat = og_feat + 0.1 * jax.random.normal(k_ag, (B, D), dtype=jnp.float32)
    labels = jax.random.randint(k_lab, (B,), 0, 3, dtype=jnp.int32)

    loss_fn = jax.jit(functools.partial(adaptive_sentence_triplet,
                                        margin=0.5, reducers='mean', beta=5.0))
    loss = loss_fn(og_feat, ag_feat, labels)
    jax.block_until_ready(loss)
    print("KERNEL_OK")
</pallas_src>

<mosaic_0001>
module attributes {stable_mosaic.version = 11 : i64} {
  func.func @_hardest_neg_kernel(%arg0: i32, %arg1: i32, %arg2: memref<128x256xbf16, #tpu.memory_space<vmem>>, %arg3: memref<256x128xbf16, #tpu.memory_space<vmem>>, %arg4: memref<128x1xf32, #tpu.memory_space<vmem>>, %arg5: memref<1x128xf32, #tpu.memory_space<vmem>>, %arg6: memref<1x128xf32, #tpu.memory_space<vmem>>, %arg7: memref<128x1xi32, #tpu.memory_space<vmem>>, %arg8: memref<1x128xi32, #tpu.memory_space<vmem>>, %arg9: memref<128x1xf32, #tpu.memory_space<vmem>>, %arg10: memref<128x1xf32, #tpu.memory_space<vmem>>, %arg11: memref<128x128xf32, #tpu.memory_space<vmem>>) attributes {dimension_semantics = [#tpu.dimension_semantics<parallel>, #tpu.dimension_semantics<arbitrary>], iteration_bounds = array<i64: 1, 1>, scalar_prefetch = 0 : i64, scratch_operands = 1 : i64, tpu.core_type = #tpu.core_type<tc>, window_params = [{transform_indices = @transform_0, window_bounds = array<i64: 128, 256>}, {transform_indices = @transform_1, window_bounds = array<i64: 256, 128>}, {transform_indices = @transform_2, window_bounds = array<i64: 128, 1>}, {transform_indices = @transform_3, window_bounds = array<i64: 1, 128>}, {transform_indices = @transform_4, window_bounds = array<i64: 1, 128>}, {transform_indices = @transform_5, window_bounds = array<i64: 128, 1>}, {transform_indices = @transform_6, window_bounds = array<i64: 1, 128>}, {transform_indices = @transform_7, window_bounds = array<i64: 128, 1>}, {transform_indices = @transform_8, window_bounds = array<i64: 128, 1>}]} {
    %c0_i32 = arith.constant 0 : i32
    %0 = arith.cmpi eq, %arg1, %c0_i32 : i32
    %1 = arith.extui %0 : i1 to i32
    %c0_i32_0 = arith.constant 0 : i32
    %2 = arith.cmpi ne, %1, %c0_i32_0 : i32
    scf.if %2 {
      %cst_19 = arith.constant -1.000000e+09 : f32
      %25 = vector.broadcast %cst_19 : f32 to vector<128x128xf32>
      %c0_20 = arith.constant 0 : index
      %c0_21 = arith.constant 0 : index
      %26 = vector.load %arg11[%c0_20, %c0_21] : memref<128x128xf32, #tpu.memory_space<vmem>>, vector<128x128xf32>
      tpu.vector_store %arg11[%c0_20, %c0_21], %25 {strides = array<i32>} : memref<128x128xf32, #tpu.memory_space<vmem>>, vector<128x128xf32>,
    } else {
    }
    %c0 = arith.constant 0 : index
    %c0_1 = arith.constant 0 : index
    %3 = vector.load %arg2[%c0, %c0_1] : memref<128x256xbf16, #tpu.memory_space<vmem>>, vector<128x256xbf16>
    %c0_2 = arith.constant 0 : index
    %c0_3 = arith.constant 0 : index
    %4 = vector.load %arg3[%c0_2, %c0_3] : memref<256x128xbf16, #tpu.memory_space<vmem>>, vector<256x128xbf16>
    %cst = arith.constant dense<0.000000e+00> : vector<128x128xf32>
    %5 = tpu.matmul %3, %4, %cst {dimension_numbers = #tpu.dot_dimension_numbers<[1], [0], [0], [1], [0, 0, 1, 1], [], []>} : vector<128x256xbf16>, vector<256x128xbf16>, vector<128x128xf32> -> vector<128x128xf32>
    %c0_4 = arith.constant 0 : index
    %c0_5 = arith.constant 0 : index
    %6 = vector.load %arg5[%c0_4, %c0_5] : memref<1x128xf32, #tpu.memory_space<vmem>>, vector<1x128xf32>
    %7 = vector.broadcast %6 : vector<1x128xf32> to vector<128x128xf32>
    %8 = arith.mulf %5, %7 : vector<128x128xf32>
    %c0_6 = arith.constant 0 : index
    %c0_7 = arith.constant 0 : index
    %9 = vector.load %arg6[%c0_6, %c0_7] : memref<1x128xf32, #tpu.memory_space<vmem>>, vector<1x128xf32>
    %10 = vector.broadcast %9 : vector<1x128xf32> to vector<128x128xf32>
    %11 = arith.addf %8, %10 : vector<128x128xf32>
    %c0_8 = arith.constant 0 : index
    %c0_9 = arith.constant 0 : index
    %12 = vector.load %arg7[%c0_8, %c0_9] : memref<128x1xi32, #tpu.memory_space<vmem>>, vector<128x1xi32>
    %c0_10 = arith.constant 0 : index
    %c0_11 = arith.constant 0 : index
    %13 = vector.load %arg8[%c0_10, %c0_11] : memref<1x128xi32, #tpu.memory_space<vmem>>, vector<1x128xi32>
    %14 = vector.broadcast %12 : vector<128x1xi32> to vector<128x128xi32>
    %15 = vector.broadcast %13 : vector<1x128xi32> to vector<128x128xi32>
    %16 = arith.cmpi ne, %14, %15 : vector<128x128xi32>
    %cst_12 = arith.constant -1.000000e+09 : f32
    %17 = vector.broadcast %cst_12 : f32 to vector<128x128xf32>
    %18 = arith.select %16, %11, %17 : vector<128x128xi1>, vector<128x128xf32>
    %c0_13 = arith.constant 0 : index
    %c0_14 = arith.constant 0 : index
    %19 = vector.load %arg11[%c0_13, %c0_14] : memref<128x128xf32, #tpu.memory_space<vmem>>, vector<128x128xf32>
    %20 = arith.maximumf %19, %18 : vector<128x128xf32>
    %c0_15 = arith.constant 0 : index
    %c0_16 = arith.constant 0 : index
    %21 = vector.load %arg11[%c0_15, %c0_16] : memref<128x128xf32, #tpu.memory_space<vmem>>, vector<128x128xf32>
    tpu.vector_store %arg11[%c0_15, %c0_16], %20 {strides = array<i32>} : memref<128x128xf32, #tpu.memory_space<vmem>>, vector<128x128xf32>,
    %c0_i32_17 = arith.constant 0 : i32
    %22 = arith.cmpi eq, %arg1, %c0_i32_17 : i32
    %23 = arith.extui %22 : i1 to i32
    %c0_i32_18 = arith.constant 0 : i32
    %24 = arith.cmpi ne, %23, %c0_i32_18 : i32
    scf.if %24 {
      %c0_19 = arith.constant 0 : index
      %c0_20 = arith.constant 0 : index
      %25 = vector.load %arg11[%c0_19, %c0_20] : memref<128x128xf32, #tpu.memory_space<vmem>>, vector<128x128xf32>
      %cst_21 = arith.constant dense<0xFF800000> : vector<128xf32>
      %26 = vector.multi_reduction <maximumf>, %25, %cst_21 [1] : vector<128x128xf32> to vector<128xf32>
      %27 = vector.shape_cast %26 : vector<128xf32> to vector<128x1xf32>
      %cst_22 = arith.constant -5.000000e+08 : f32
      %28 = vector.broadcast %cst_22 : f32 to vector<128x1xf32>
      %29 = arith.cmpf ogt, %27, %28 : vector<128x1xf32>
      %c0_23 = arith.constant 0 : index
      %c0_24 = arith.constant 0 : index
      %30 = vector.load %arg4[%c0_23, %c0_24] : memref<128x1xf32, #tpu.memory_space<vmem>>, vector<128x1xf32>
      %31 = arith.mulf %27, %30 : vector<128x1xf32>
      %cst_25 = arith.constant 1.000000e+00 : f32
      %32 = vector.broadcast %cst_25 : f32 to vector<128x1xf32>
      %33 = arith.subf %32, %31 : vector<128x1xf32>
      %cst_26 = arith.constant 0.000000e+00 : f32
      %cst_27 = arith.constant 2.000000e+00 : f32
      %34 = vector.broadcast %cst_26 : f32 to vector<128x1xf32>
      %35 = arith.maximumf %34, %33 : vector<128x1xf32>
      %36 = vector.broadcast %cst_27 : f32 to vector<128x1xf32>
      %37 = arith.minimumf %36, %35 : vector<128x1xf32>
      %c0_28 = arith.constant 0 : index
      %c0_29 = arith.constant 0 : index
      %38 = vector.load %arg9[%c0_28, %c0_29] : memref<128x1xf32, #tpu.memory_space<vmem>>, vector<128x1xf32>
      %39 = arith.subf %38, %37 : vector<128x1xf32>
      %cst_30 = arith.constant 5.000000e-01 : f32
      %40 = vector.broadcast %cst_30 : f32 to vector<128x1xf32>
      %41 = arith.addf %39, %40 : vector<128x1xf32>
      %cst_31 = arith.constant -1.000000e+09 : f32
      %42 = vector.broadcast %cst_31 : f32 to vector<128x1xf32>
      %43 = arith.select %29, %41, %42 : vector<128x1xi1>, vector<128x1xf32>
      %c0_32 = arith.constant 0 : index
      %c0_33 = arith.constant 0 : index
      %44 = vector.load %arg10[%c0_32, %c0_33] : memref<128x1xf32, #tpu.memory_space<vmem>>, vector<128x1xf32>
      tpu.vector_store %arg10[%c0_32, %c0_33], %43 {strides = array<i32>} : memref<128x1xf32, #tpu.memory_space<vmem>>, vector<128x1xf32>,
    } else {
    }
    return
  }
  func.func @transform_0(%arg0: i32, %arg1: i32) -> (i32, i32) {
    %c0_i32 = arith.constant 0 : i32
    %c0_i32_0 = arith.constant 0 : i32
    return %arg0, %c0_i32 : i32, i32
  }
  func.func @transform_1(%arg0: i32, %arg1: i32) -> (i32, i32) {
    %c0_i32 = arith.constant 0 : i32
    %c0_i32_0 = arith.constant 0 : i32
    return %c0_i32, %arg1 : i32, i32
  }
  func.func @transform_2(%arg0: i32, %arg1: i32) -> (i32, i32) {
    %c0_i32 = arith.constant 0 : i32
    %c0_i32_0 = arith.constant 0 : i32
    return %arg0, %c0_i32 : i32, i32
  }
  func.func @transform_3(%arg0: i32, %arg1: i32) -> (i32, i32) {
    %c0_i32 = arith.constant 0 : i32
    %c0_i32_0 = arith.constant 0 : i32
    return %c0_i32, %arg1 : i32, i32
  }
  func.func @transform_4(%arg0: i32, %arg1: i32) -> (i32, i32) {
    %c0_i32 = arith.constant 0 : i32
    %c0_i32_0 = arith.constant 0 : i32
    return %c0_i32, %arg1 : i32, i32
  }
  func.func @transform_5(%arg0: i32, %arg1: i32) -> (i32, i32) {
    %c0_i32 = arith.constant 0 : i32
    %c0_i32_0 = arith.constant 0 : i32
    return %arg0, %c0_i32 : i32, i32
  }
  func.func @transform_6(%arg0: i32, %arg1: i32) -> (i32, i32) {
    %c0_i32 = arith.constant 0 : i32
    %c0_i32_0 = arith.constant 0 : i32
    return %c0_i32, %arg1 : i32, i32
  }
  func.func @transform_7(%arg0: i32, %arg1: i32) -> (i32, i32) {
    %c0_i32 = arith.constant 0 : i32
    %c0_i32_0 = arith.constant 0 : i32
    return %arg0, %c0_i32 : i32, i32
  }
  func.func @transform_8(%arg0: i32, %arg1: i32) -> (i32, i32) {
    %c0_i32 = arith.constant 0 : i32
    %c0_i32_0 = arith.constant 0 : i32
    return %arg0, %c0_i32 : i32, i32
  }
}

</mosaic_0001>

<bundles_post_ra>
// kernel: adaptive_sentence_triplet.1
= control target key start
LH: loop header
LB: loop body
LE: loop exit
PB: predicated region body
PF: predicated region fallthrough
CT: control target
= control target key end

     0   :  { %v972_v2 = vmov 0   ;;  %s1448_s1 = inlined_call_operand.vmem [shape: bf16[256,128], index: 1, kind: input, shape index: {}]   ;;  %s1449_s5 = inlined_call_operand.vmem [shape: s32[128,1], index: 5, kind: input, shape index: {}]   ;;  %s1450_s6 = inlined_call_operand.vmem [shape: s32[1,128], index: 6, kind: input, shape index: {}]   ;;  %s1451_s0 = inlined_call_operand.vmem [shape: bf16[128,256], index: 0, kind: input, shape index: {}]   ;;  %s1452_s3 = inlined_call_operand.vmem [shape: f32[1,128], index: 3, kind: input, shape index: {}]   ;;  %s1453_s4 = inlined_call_operand.vmem [shape: f32[1,128], index: 4, kind: input, shape index: {}]   ;;  %s1454_s2 = inlined_call_operand.vmem [shape: f32[128,1], index: 2, kind: input, shape index: {}]   ;;  %s1455_s7 = inlined_call_operand.vmem [shape: f32[128,1], index: 7, kind: input, shape index: {}]   ;;  %s1456_s8 = inlined_call_operand.vmem [shape: f32[128,1], index: 8, kind: output, shape index: {}]  }
   0x1   :  { %v940_v0 = vld [vmem:[%s1448_s1 + $0x38] sm:$0xff]  ;;  %966 = vset.pattern.permute.xlu0 %v972_v2  ;;  %967 = vset.pattern.permute.xlu1 %v972_v2  ;;  %v939_v3 = vld [vmem:[%s1448_s1 + $0x30] sm:$0xff]  ;;  %v411_v4 = vld [vmem:[%s1449_s5] sm:$0xff] }
   0x2   :  { %v948_v1 = vld [vmem:[%s1448_s1 + $0x78] sm:$0xff]  ;;  %968 = vset.pattern.permute.xlu2 %v972_v2  ;;  %273 = vmatpush.bf16.msra.mxu0 %v940_v0  ;;  %v947_v5 = vld [vmem:[%s1448_s1 + $0x70] sm:$0xff]  ;;  %v938_v6 = vld [vmem:[%s1448_s1 + $0x28] sm:$0xff] }
   0x3   :  { %949 = vmatpush.bf16.msra.mxu2 %v940_v0  ;;  %322 = vmatpush.bf16.msra.mxu1 %v948_v1  ;;  %v413_v7 = vld [vmem:[%s1449_s5 + $0x10] sm:$0xff]  ;;  %v946_v8 = vld [vmem:[%s1448_s1 + $0x68] sm:$0xff]  ;;  %v937_v10 = vld [vmem:[%s1448_s1 + $0x20] sm:$0xff] }
   0x4   :  { %957 = vmatpush.bf16.msra.mxu3 %v948_v1  ;;  %429 = vperm.xlu0 %966, %v411_v4   ;;  %v412_v9 = vld [vmem:[%s1449_s5 + $0x8] sm:$0xff]  ;;  %v415_v11 = vld [vmem:[%s1449_s5 + $0x20] sm:$0xff]  ;;  %v414_v13 = vld [vmem:[%s1449_s5 + $0x18] sm:$0xff] }
   0x5   :  { %435 = vperm.xlu1 %967, %v413_v7   ;;  %v945_v12 = vld [vmem:[%s1448_s1 + $0x60] sm:$0xff]  ;;  %441 = vperm.xlu2 %968, %v415_v11   ;;  %v936_v14 = vld [vmem:[%s1448_s1 + $0x18] sm:$0xff]  ;;  %v417_v16 = vld [vmem:[%s1449_s5 + $0x30] sm:$0xff] }
   0x6   :  { %274 = vmatpush.bf16.msra.mxu0 %v939_v3  ;;  %v944_v15 = vld [vmem:[%s1448_s1 + $0x58] sm:$0xff]  ;;  %v935_v17 = vld [vmem:[%s1448_s1 + $0x10] sm:$0xff]  ;;  %v416_v18 = vld [vmem:[%s1449_s5 + $0x28] sm:$0xff] }
   0x7   :  { %950 = vmatpush.bf16.msra.mxu2 %v939_v3  ;;  %323 = vmatpush.bf16.msra.mxu1 %v947_v5  ;;  %v943_v19 = vld [vmem:[%s1448_s1 + $0x50] sm:$0xff]  ;;  %v418_v20 = vld [vmem:[%s1449_s5 + $0x38] sm:$0xff]  ;;  %v934_v21 = vld [vmem:[%s1448_s1 + $0x8] sm:$0xff] }
   0x8   :  { %958 = vmatpush.bf16.msra.mxu3 %v947_v5  ;;  %v942_v22 = vld [vmem:[%s1448_s1 + $0x48] sm:$0xff]  ;;  %v933_v23 = vld [vmem:[%s1448_s1] sm:$0xff]  ;;  %v421_v37 = vld [vmem:[%s1449_s5 + $0x50] sm:$0xff] }
   0x9   :  { %v791_v24 = vld [vmem:[%s1451_s0] sm:$0xf]  ;;  %v918_v26 = vld [vmem:[%s1451_s0 + $0x4] sm:$0xf0]  ;;  %v917_v31 = vld [vmem:[%s1451_s0 + $0x4] sm:$0xf] }
   0xa   :  { %275 = vmatpush.bf16.msra.mxu0 %v938_v6  ;;  %v941_v25 = vld [vmem:[%s1448_s1 + $0x40] sm:$0xff]  ;;  %v420_v27 = vld [vmem:[%s1449_s5 + $0x48] sm:$0xff]  ;;  %v792_v35 = vor.u32 %v918_v26, %v791_v24  ;;  %v422_v41 = vld [vmem:[%s1449_s5 + $0x58] sm:$0xff] }
   0xb   :  { %951 = vmatpush.bf16.msra.mxu2 %v938_v6  ;;  %324 = vmatpush.bf16.msra.mxu1 %v946_v8  ;;  %v419_v28 = vld [vmem:[%s1449_s5 + $0x40] sm:$0xff]  ;;  %v926_v30 = vld [vmem:[%s1451_s0 + $0x44] sm:$0xf0]  ;;  %v793_v32 = vld [vmem:[%s1451_s0 + $0x8] sm:$0xf0] }
   0xc   :  { %959 = vmatpush.bf16.msra.mxu3 %v946_v8  ;;  %432 = vperm.xlu0 %966, %v412_v9   ;;  %v823_v29 = vld [vmem:[%s1451_s0 + $0x40] sm:$0xf]  ;;  %v925_v33 = vld [vmem:[%s1451_s0 + $0x44] sm:$0xf]  ;;  %v825_v34 = vld [vmem:[%s1451_s0 + $0x48] sm:$0xf0]  ;;  %v796_v38 = vor.u32 %v917_v31, %v793_v32 }
   0xd   :  { %438 = vperm.xlu1 %967, %v414_v13   ;;  %444 = vperm.xlu2 %968, %v416_v18   ;;  %v824_v36 = vor.u32 %v926_v30, %v823_v29  ;;  %v828_v39 = vor.u32 %v925_v33, %v825_v34  ;;  %v423_v40 = vld [vmem:[%s1449_s5 + $0x60] sm:$0xff]  ;;  %v424_v42 = vld [vmem:[%s1449_s5 + $0x68] sm:$0xff]  ;;  %v799_v43 = vld [vmem:[%s1451_s0 + $0x10] sm:$0xf] }
   0xe   :  { %276 = vmatpush.bf16.msra.mxu0 %v937_v10  ;;  %v920_v44 = vld [vmem:[%s1451_s0 + $0x14] sm:$0xf0]  ;;  %v425_v46 = vld [vmem:[%s1449_s5 + $0x70] sm:$0xff]  ;;  %v801_v50 = vld [vmem:[%s1451_s0 + $0x18] sm:$0xf0] }
   0xf   :  { %952 = vmatpush.bf16.msra.mxu2 %v937_v10  ;;  %325 = vmatpush.bf16.msra.mxu1 %v945_v12  ;;  %v426_v45 = vld [vmem:[%s1449_s5 + $0x78] sm:$0xff]  ;;  %v831_v47 = vld [vmem:[%s1451_s0 + $0x50] sm:$0xf]  ;;  %v919_v49 = vld [vmem:[%s1451_s0 + $0x14] sm:$0xf]  ;;  %v800_v53 = vor.u32 %v920_v44, %v799_v43 }
  0x10   :  { %960 = vmatpush.bf16.msra.mxu3 %v945_v12  ;;  %v928_v48 = vld [vmem:[%s1451_s0 + $0x54] sm:$0xf0]  ;;  %v927_v51 = vld [vmem:[%s1451_s0 + $0x54] sm:$0xf]  ;;  %v833_v52 = vld [vmem:[%s1451_s0 + $0x58] sm:$0xf0]  ;;  %v804_v55 = vor.u32 %v919_v49, %v801_v50 }
  0x11   :  { %v832_v54 = vor.u32 %v928_v48, %v831_v47  ;;  %v836_v56 = vor.u32 %v927_v51, %v833_v52  ;;  %v807_v57 = vld [vmem:[%s1451_s0 + $0x20] sm:$0xf]  ;;  %v922_v58 = vld [vmem:[%s1451_s0 + $0x24] sm:$0xf0]  ;;  %v921_v61 = vld [vmem:[%s1451_s0 + $0x24] sm:$0xf] }
  0x12   :  { %277 = vmatpush.bf16.msra.mxu0 %v936_v14  ;;  %v839_v59 = vld [vmem:[%s1451_s0 + $0x60] sm:$0xf]  ;;  %v930_v60 = vld [vmem:[%s1451_s0 + $0x64] sm:$0xf0]  ;;  %v809_v62 = vld [vmem:[%s1451_s0 + $0x28] sm:$0xf0]  ;;  %v808_v1 = vor.u32 %v922_v58, %v807_v57 }
  0x13   :  { %953 = vmatpush.bf16.msra.mxu2 %v936_v14  ;;  %326 = vmatpush.bf16.msra.mxu1 %v944_v15  ;;  %v929_v63 = vld [vmem:[%s1451_s0 + $0x64] sm:$0xf]  ;;  %v841_v0 = vld [vmem:[%s1451_s0 + $0x68] sm:$0xf0]  ;;  %v840_v2 = vor.u32 %v930_v60, %v839_v59  ;;  %v812_v3 = vor.u32 %v921_v61, %v809_v62  ;;  %v815_v5 = vld [vmem:[%s1451_s0 + $0x30] sm:$0xf] }
  0x14   :  { %961 = vmatpush.bf16.msra.mxu3 %v944_v15  ;;  %447 = vperm.xlu0 %966, %v417_v16   ;;  %v844_v4 = vor.u32 %v929_v63, %v841_v0  ;;  %v924_v6 = vld [vmem:[%s1451_s0 + $0x34] sm:$0xf0]  ;;  %v847_v7 = vld [vmem:[%s1451_s0 + $0x70] sm:$0xf]  ;;  %v923_v9 = vld [vmem:[%s1451_s0 + $0x34] sm:$0xf] }
  0x15   :  { %450 = vperm.xlu1 %967, %v418_v20   ;;  %453 = vperm.xlu2 %968, %v419_v28   ;;  %v932_v8 = vld [vmem:[%s1451_s0 + $0x74] sm:$0xf0]  ;;  %v817_v10 = vld [vmem:[%s1451_s0 + $0x38] sm:$0xf0]  ;;  %v931_v11 = vld [vmem:[%s1451_s0 + $0x74] sm:$0xf]  ;;  %v816_v13 = vor.u32 %v924_v6, %v815_v5 }
  0x16   :  { %278 = vmatpush.bf16.msra.mxu0 %v935_v17  ;;  %v849_v12 = vld [vmem:[%s1451_s0 + $0x78] sm:$0xf0]  ;;  %v848_v14 = vor.u32 %v932_v8, %v847_v7  ;;  %v820_v15 = vor.u32 %v923_v9, %v817_v10  ;;  %v1224_v24 = vld [vmem:[%s1450_s6] ss:$0 sm:$0xff] }
  0x17   :  { %954 = vmatpush.bf16.msra.mxu2 %v935_v17  ;;  %327 = vmatpush.bf16.msra.mxu1 %v943_v19  ;;  %v852_v16 = vor.u32 %v931_v11, %v849_v12 }
  0x18   :  { %962 = vmatpush.bf16.msra.mxu3 %v943_v19 }
  0x1a   :  { %279 = vmatpush.bf16.msra.mxu0 %v934_v21 }
  0x1b   :  { %955 = vmatpush.bf16.msra.mxu2 %v934_v21  ;;  %328 = vmatpush.bf16.msra.mxu1 %v942_v22 }
  0x1c   :  { %963 = vmatpush.bf16.msra.mxu3 %v942_v22  ;;  %456 = vperm.xlu0 %966, %v420_v27   ;;  %v1229_v27 = vld [vmem:[%s1453_s4] ss:$0 sm:$0xff] }
  0x1d   :  { %459 = vperm.xlu1 %967, %v421_v37   ;;  %462 = vperm.xlu2 %968, %v422_v41  }
  0x1e   :  { %280 = vmatpush.bf16.msra.mxu0 %v933_v23 }
  0x1f   :  { %956 = vmatpush.bf16.msra.mxu2 %v933_v23  ;;  %329 = vmatpush.bf16.msra.mxu1 %v941_v25  ;;  %v1219_v23 = vld [vmem:[%s1452_s3] ss:$0 sm:$0xff] }
  0x20   :  { %964 = vmatpush.bf16.msra.mxu3 %v941_v25 }
  0x21   :  { %281 = vmatmul.bf16.vlgmr.msra.gmra.mxu0 %v792_v35 }
  0x22   :  { %301 = vmatmul.bf16.vlgmr.msra.gmra.mxu2 %v824_v36  ;;  %330 = vmatmul.bf16.vlgmr.msra.gmra.mxu1 %v796_v38 }
  0x23   :  { %350 = vmatmul.bf16.vlgmr.msra.gmra.mxu3 %v828_v39 }
  0x24   :  { %465 = vperm.xlu0 %966, %v423_v40  }
  0x25   :  { %468 = vperm.xlu1 %967, %v424_v42   ;;  %471 = vperm.xlu2 %968, %v425_v46  }
  0x2c   :  { %474 = vperm.xlu0 %966, %v426_v45  }
  0x31   :  { %286 = vmatmul.bf16.gmra.mxu0 %v800_v53 }
  0x32   :  { %306 = vmatmul.bf16.gmra.mxu2 %v832_v54  ;;  %335 = vmatmul.bf16.gmra.mxu1 %v804_v55 }
  0x33   :  { %355 = vmatmul.bf16.gmra.mxu3 %v836_v56 }
  0x41   :  { %291 = vmatmul.bf16.gmra.mxu0 %v808_v1 }
  0x42   :  { %311 = vmatmul.bf16.gmra.mxu2 %v840_v2  ;;  %340 = vmatmul.bf16.gmra.mxu1 %v812_v3 }
  0x43   :  { %360 = vmatmul.bf16.gmra.mxu3 %v844_v4 }
  0x51   :  { %296 = vmatmul.bf16.gmra.mxu0 %v816_v13 }
  0x52   :  { %316 = vmatmul.bf16.gmra.mxu2 %v848_v14  ;;  %345 = vmatmul.bf16.gmra.mxu1 %v820_v15 }
  0x53   :  { %365 = vmatmul.bf16.gmra.mxu3 %v852_v16 }
  0x5f   :  { %v1210_v17 = vpop.permute.xlu2 %441 }
  0x60   :  { %vm481_vm8 = vcmp.ne.s32.totalorder %v1210_v17, %v1224_v24 }
  0x67   :  { %v1214_v20 = vpop.permute.xlu2 %444 }
  0x68   :  { %vm482_vm10 = vcmp.ne.s32.totalorder %v1214_v20, %v1224_v24 }
  0x6f   :  { %v454_v39 = vpop.permute.xlu2 %453 }
  0x70   :  { %vm485_vm1 = vcmp.ne.s32.totalorder %v454_v39, %v1224_v24 }
  0x76   :  { %v430_v18 = vpop.permute.xlu0 %429 }
  0x77   :  { %v1212_v19 = vpop.permute.xlu1 %435  ;;  %vm477_vm0 = vcmp.ne.s32.totalorder %v430_v18, %v1224_v24 }
  0x78   :  { %vm479_vm4 = vcmp.ne.s32.totalorder %v1212_v19, %v1224_v24 }
  0x7e   :  { %v433_v21 = vpop.permute.xlu0 %432 }
  0x7f   :  { %v439_v32 = vpop.permute.xlu1 %438  ;;  %vm478_vm2 = vcmp.ne.s32.totalorder %v433_v21, %v1224_v24 }
  0x80   :  { %vm480_vm6 = vcmp.ne.s32.totalorder %v439_v32, %v1224_v24 }
  0x86   :  { %v1234_v38 = vpop.permute.xlu0 %447 }
  0x87   :  { %v1242_v52 = vpop.permute.xlu1 %450  ;;  %vm483_vm12 = vcmp.ne.s32.totalorder %v1234_v38, %v1224_v24 }
  0x88   :  { %vm484_vm14 = vcmp.ne.s32.totalorder %v1242_v52, %v1224_v24  ;;  %v624_v52 = vld [vmem:[%s1454_s2] sm:$0xff] }
  0x8e   :  { %v457_v55 = vpop.permute.xlu0 %456 }
  0x8f   :  { %vm486_vm3 = vcmp.ne.s32.totalorder %v457_v55, %v1224_v24  ;;  %v460_v6 = vpop.permute.xlu1 %459 }
  0x90   :  { %vm487_vm5 = vcmp.ne.s32.totalorder %v460_v6, %v1224_v24 }
  0x9e   :  { %v282_v22 = vpop.f32.mrf.mxu0 }
  0x9f   :  { %v331_v25 = vpop.f32.mrf.mxu1 }
  0xa0   :  { %v332_v26 = vadd.f32 %v331_v25, %v282_v22 }
  0xa2   :  { %v375_v28 = vmul.f32 %v1219_v23, %v332_v26 }
  0xa4   :  { %v395_v30 = vadd.f32 %v1229_v27, %v375_v28  ;;  %v463_v28 = vpop.permute.xlu2 %462 }
  0xa5   :  { %v302_v29 = vpop.f32.mrf.mxu2  ;;  %vm488_vm7 = vcmp.ne.s32.totalorder %v463_v28, %v1224_v24 }
  0xa6   :  { %v351_v31 = vpop.f32.mrf.mxu3  ;;  %v284_v34 = vpop.f32.mrf.mxu0  ;;  %v493_v35 = vsel %vm477_vm0, %v395_v30, -1e+09  ;;  %vm768_vm0 = vcmask 7168  }
  0xa7   :  { %v352_v33 = vadd.f32 %v351_v31, %v302_v29  ;;  %v333_v36 = vpop.f32.mrf.mxu1  ;;  %v525_v37 = vmax.f32 %v493_v35, -1e+09 }
  0xa8   :  { %v334_v41 = vadd.f32 %v333_v36, %v284_v34 }
  0xa9   :  { %v383_v40 = vmul.f32 %v1219_v23, %v352_v33  ;;  %576 = vmax.xlane.f32.xlu1 %v525_v37 }
  0xaa   :  { %v376_v42 = vmul.f32 %v1219_v23, %v334_v41 }
  0xab   :  { %v403_v43 = vadd.f32 %v1229_v27, %v383_v40 }
  0xac   :  { %v396_v50 = vadd.f32 %v1229_v27, %v376_v42  ;;  %v472_v6 = vpop.permute.xlu2 %471 }
  0xad   :  { %v304_v44 = vpop.f32.mrf.mxu2  ;;  %v501_v45 = vsel %vm485_vm1, %v403_v43, -1e+09  ;;  %vm491_vm13 = vcmp.ne.s32.totalorder %v472_v6, %v1224_v24 }
  0xae   :  { %v353_v46 = vpop.f32.mrf.mxu3  ;;  %v533_v47 = vmax.f32 %v501_v45, -1e+09  ;;  %v287_v49 = vpop.f32.mrf.mxu0  ;;  %v494_v58 = vsel %vm478_vm2, %v396_v50, -1e+09 }
  0xaf   :  { %v354_v48 = vadd.f32 %v353_v46, %v304_v44  ;;  %v336_v51 = vpop.f32.mrf.mxu1  ;;  %v526_v63 = vmax.f32 %v494_v58, -1e+09  ;;  %v466_v44 = vpop.permute.xlu0 %465 }
  0xb0   :  { %592 = vmax.xlane.f32.xlu2 %v533_v47  ;;  %v337_v54 = vadd.f32 %v336_v51, %v287_v49  ;;  %vm489_vm9 = vcmp.ne.s32.totalorder %v466_v44, %v1224_v24  ;;  %v625_v44 = vld [vmem:[%s1454_s2 + $0x8] sm:$0xff] }
  0xb1   :  { %v384_v53 = vmul.f32 %v1219_v23, %v354_v48 }
  0xb2   :  { %v377_v56 = vmul.f32 %v1219_v23, %v337_v54 }
  0xb3   :  { %v404_v57 = vadd.f32 %v1229_v27, %v384_v53 }
  0xb4   :  { %v397_v2 = vadd.f32 %v1229_v27, %v377_v56 }
  0xb5   :  { %v307_v59 = vpop.f32.mrf.mxu2  ;;  %v502_v60 = vsel %vm486_vm3, %v404_v57, -1e+09  ;;  %v469_v57 = vpop.permute.xlu1 %468 }
  0xb6   :  { %v356_v61 = vpop.f32.mrf.mxu3  ;;  %v534_v62 = vmax.f32 %v502_v60, -1e+09  ;;  %v289_v1 = vpop.f32.mrf.mxu0  ;;  %v495_v8 = vsel %vm479_vm4, %v397_v2, -1e+09  ;;  %vm490_vm11 = vcmp.ne.s32.totalorder %v469_v57, %v1224_v24  ;;  %v626_v57 = vld [vmem:[%s1454_s2 + $0x10] sm:$0xff] }
  0xb7   :  { %v357_v0 = vadd.f32 %v356_v61, %v307_v59  ;;  %v338_v3 = vpop.f32.mrf.mxu1  ;;  %v527_v14 = vmax.f32 %v495_v8, -1e+09 }
  0xb8   :  { %594 = vmax.xlane.f32.xlu0 %v534_v62  ;;  %578 = vmax.xlane.f32.xlu2 %v526_v63  ;;  %v339_v5 = vadd.f32 %v338_v3, %v289_v1 }
  0xb9   :  { %v385_v4 = vmul.f32 %v1219_v23, %v357_v0 }
  0xba   :  { %v378_v7 = vmul.f32 %v1219_v23, %v339_v5 }
  0xbb   :  { %v405_v9 = vadd.f32 %v1229_v27, %v385_v4 }
  0xbc   :  { %v398_v12 = vadd.f32 %v1229_v27, %v378_v7 }
  0xbd   :  { %v309_v10 = vpop.f32.mrf.mxu2  ;;  %v503_v11 = vsel %vm487_vm5, %v405_v9, -1e+09 }
  0xbe   :  { %v358_v13 = vpop.f32.mrf.mxu3  ;;  %v535_v15 = vmax.f32 %v503_v11, -1e+09  ;;  %v292_v18 = vpop.f32.mrf.mxu0  ;;  %v496_v19 = vsel %vm480_vm6, %v398_v12, -1e+09 }
  0xbf   :  { %v359_v16 = vadd.f32 %v358_v13, %v309_v10  ;;  %v341_v21 = vpop.f32.mrf.mxu1  ;;  %v528_v22 = vmax.f32 %v496_v19, -1e+09  ;;  %v475_v19 = vpop.permute.xlu0 %474 }
  0xc0   :  { %580 = vmax.xlane.f32.xlu0 %v527_v14  ;;  %596 = vmax.xlane.f32.xlu1 %v535_v15  ;;  %v342_v26 = vadd.f32 %v341_v21, %v292_v18  ;;  %vm492_vm15 = vcmp.ne.s32.totalorder %v475_v19, %v1224_v24  ;;  %v704_v24 = vld [vmem:[%s1455_s7] sm:$0xff] }
  0xc1   :  { %v386_v25 = vmul.f32 %v1219_v23, %v359_v16  ;;  %582 = vmax.xlane.f32.xlu2 %v528_v22 }
  0xc2   :  { %v379_v29 = vmul.f32 %v1219_v23, %v342_v26 }
  0xc3   :  { %v406_v30 = vadd.f32 %v1229_v27, %v386_v25 }
  0xc4   :  { %v399_v33 = vadd.f32 %v1229_v27, %v379_v29 }
  0xc5   :  { %v312_v31 = vpop.f32.mrf.mxu2  ;;  %v504_v32 = vsel %vm488_vm7, %v406_v30, -1e+09 }
  0xc6   :  { %v361_v34 = vpop.f32.mrf.mxu3  ;;  %v294_v36 = vpop.f32.mrf.mxu0  ;;  %v497_v37 = vsel %vm481_vm8, %v399_v33, -1e+09  ;;  %v536_v40 = vmax.f32 %v504_v32, -1e+09 }
  0xc7   :  { %v362_v35 = vadd.f32 %v361_v34, %v312_v31  ;;  %v343_v39 = vpop.f32.mrf.mxu1  ;;  %v529_v41 = vmax.f32 %v497_v37, -1e+09 }
  0xc8   :  { %v344_v43 = vadd.f32 %v343_v39, %v294_v36 }
  0xc9   :  { %v387_v42 = vmul.f32 %v1219_v23, %v362_v35  ;;  %598 = vmax.xlane.f32.xlu2 %v536_v40  ;;  %584 = vmax.xlane.f32.xlu1 %v529_v41  ;;  %v712_v40 = vld [vmem:[%s1455_s7 + $0x40] sm:$0xff]  ;;  %v633_v41 = vld [vmem:[%s1454_s2 + $0x48] sm:$0xff] }
  0xca   :  { %v380_v45 = vmul.f32 %v1219_v23, %v344_v43 }
  0xcb   :  { %v407_v46 = vadd.f32 %v1229_v27, %v387_v42 }
  0xcc   :  { %v400_v48 = vadd.f32 %v1229_v27, %v380_v45 }
  0xcd   :  { %v314_v17 = vpop.f32.mrf.mxu2  ;;  %v505_v47 = vsel %vm489_vm9, %v407_v46, -1e+09 }
  0xce   :  { %v363_v49 = vpop.f32.mrf.mxu3  ;;  %v537_v50 = vmax.f32 %v505_v47, -1e+09  ;;  %v297_v53 = vpop.f32.mrf.mxu0  ;;  %v498_v54 = vsel %vm482_vm10, %v400_v48, -1e+09 }
  0xcf   :  { %v364_v51 = vadd.f32 %v363_v49, %v314_v17  ;;  %v346_v55 = vpop.f32.mrf.mxu1  ;;  %v530_v56 = vmax.f32 %v498_v54, -1e+09 }
  0xd0   :  { %600 = vmax.xlane.f32.xlu0 %v537_v50  ;;  %v347_v59 = vadd.f32 %v346_v55, %v297_v53  ;;  %v713_v55 = vld [vmem:[%s1455_s7 + $0x48] sm:$0xff] }
  0xd1   :  { %v388_v58 = vmul.f32 %v1219_v23, %v364_v51  ;;  %586 = vmax.xlane.f32.xlu2 %v530_v56 }
  0xd2   :  { %v381_v60 = vmul.f32 %v1219_v23, %v347_v59  ;;  %v705_v59 = vld [vmem:[%s1455_s7 + $0x8] sm:$0xff] }
  0xd3   :  { %v408_v61 = vadd.f32 %v1229_v27, %v388_v58 }
  0xd4   :  { %v401_v62 = vadd.f32 %v1229_v27, %v381_v60  ;;  %v634_v60 = vld [vmem:[%s1454_s2 + $0x50] sm:$0xff] }
  0xd5   :  { %v317_v20 = vpop.f32.mrf.mxu2  ;;  %v506_v63 = vsel %vm490_vm11, %v408_v61, -1e+09 }
  0xd6   :  { %v366_v0 = vpop.f32.mrf.mxu3  ;;  %v299_v2 = vpop.f32.mrf.mxu0  ;;  %v499_v3 = vsel %vm483_vm12, %v401_v62, -1e+09  ;;  %v538_v28 = vmax.f32 %v506_v63, -1e+09  ;;  %v627_v63 = vld [vmem:[%s1454_s2 + $0x18] sm:$0xff] }
  0xd7   :  { %v367_v1 = vadd.f32 %v366_v0, %v317_v20  ;;  %v348_v4 = vpop.f32.mrf.mxu1  ;;  %v531_v5 = vmax.f32 %v499_v3, -1e+09 }
  0xd8   :  { %v349_v8 = vadd.f32 %v348_v4, %v299_v2 }
  0xd9   :  { %v389_v7 = vmul.f32 %v1219_v23, %v367_v1  ;;  %588 = vmax.xlane.f32.xlu0 %v531_v5 }
  0xda   :  { %v382_v9 = vmul.f32 %v1219_v23, %v349_v8 }
  0xdb   :  { %v409_v10 = vadd.f32 %v1229_v27, %v389_v7 }
  0xdc   :  { %v402_v38 = vadd.f32 %v1229_v27, %v382_v9 }
  0xdd   :  { %v319_v11 = vpop.f32.mrf.mxu2  ;;  %v507_v12 = vsel %vm491_vm13, %v409_v10, -1e+09 }
  0xde   :  { %v368_v13 = vpop.f32.mrf.mxu3  ;;  %v539_v14 = vmax.f32 %v507_v12, -1e+09  ;;  %v500_v16 = vsel %vm484_vm14, %v402_v38, -1e+09 }
  0xdf   :  { %v369_v15 = vadd.f32 %v368_v13, %v319_v11  ;;  %v532_v18 = vmax.f32 %v500_v16, -1e+09  ;;  %v706_v13 = vld [vmem:[%s1455_s7 + $0x10] sm:$0xff] }
  0xe0   :  { %604 = vmax.xlane.f32.xlu2 %v539_v14  ;;  %v714_v16 = vld [vmem:[%s1455_s7 + $0x50] sm:$0xff] }
  0xe1   :  { %v390_v21 = vmul.f32 %v1219_v23, %v369_v15  ;;  %590 = vmax.xlane.f32.xlu1 %v532_v18  ;;  %v632_v23 = vld [vmem:[%s1454_s2 + $0x40] sm:$0xff] }
  0xe3   :  { %v410_v22 = vadd.f32 %v1229_v27, %v390_v21  ;;  %v707_v21 = vld [vmem:[%s1455_s7 + $0x18] sm:$0xff] }
  0xe5   :  { %v508_v25 = vsel %vm492_vm15, %v410_v22, -1e+09  ;;  %v635_v22 = vld [vmem:[%s1454_s2 + $0x58] sm:$0xff] }
  0xe6   :  { %v540_v26 = vmax.f32 %v508_v25, -1e+09 }
  0xe8   :  { %606 = vmax.xlane.f32.xlu0 %v540_v26 }
  0xe9   :  { %602 = vmax.xlane.f32.xlu1 %v538_v28  ;;  %v628_v28 = vld [vmem:[%s1454_s2 + $0x20] sm:$0xff] }
 0x11c   :  { %v577_v29 = vpop.xlane.xlu1 %576 }
 0x11d   :  { %v640_v30 = vmul.f32 %v624_v52, %v577_v29  ;;  %vm608_vm1 = vcmp.gt.f32.partialorder %v577_v29, -5e+08 }
 0x11f   :  { %v656_v31 = vsub.f32 1.0, %v640_v30 }
 0x121   :  { %v672_v32 = vmax.f32 %v656_v31, 0.0 }
 0x123   :  { %v593_v27 = vpop.xlane.xlu2 %592  ;;  %v688_v33 = vmin.f32 %v672_v32, 2.0 }
 0x124   :  { %v648_v34 = vmul.f32 %v632_v23, %v593_v27  ;;  %vm616_vm2 = vcmp.gt.f32.partialorder %v593_v27, -5e+08 }
 0x125   :  { %v720_v35 = vsub.f32 %v704_v24, %v688_v33  ;;  %v636_v33 = vld [vmem:[%s1454_s2 + $0x60] sm:$0xff] }
 0x126   :  { %v664_v36 = vsub.f32 1.0, %v648_v34 }
 0x127   :  { %v736_v37 = vadd.f32 0.5, %v720_v35 }
 0x128   :  { %v680_v39 = vmax.f32 %v664_v36, 0.0 }
 0x129   :  { %v752_v42 = vsel %vm608_vm1, %v736_v37, -1e+09 }
 0x12a   :  { %v696_v43 = vmin.f32 %v680_v39, 2.0  ;;  %769 = vst.msk [vmem:[%s1456_s8] sm:$0xff] %vm768_vm0, %v752_v42  ;;  %v715_v42 = vld [vmem:[%s1455_s7 + $0x58] sm:$0xff] }
 0x12b   :  { %v595_v45 = vpop.xlane.xlu0 %594  ;;  %v579_v46 = vpop.xlane.xlu2 %578 }
 0x12c   :  { %v728_v17 = vsub.f32 %v712_v40, %v696_v43  ;;  %v649_v47 = vmul.f32 %v633_v41, %v595_v45  ;;  %v641_v48 = vmul.f32 %v625_v44, %v579_v46  ;;  %vm617_vm3 = vcmp.gt.f32.partialorder %v595_v45, -5e+08  ;;  %v629_v45 = vld [vmem:[%s1454_s2 + $0x28] sm:$0xff] }
 0x12d   :  { %vm609_vm4 = vcmp.gt.f32.partialorder %v579_v46, -5e+08 }
 0x12e   :  { %v744_v49 = vadd.f32 0.5, %v728_v17  ;;  %v665_v50 = vsub.f32 1.0, %v649_v47  ;;  %v657_v51 = vsub.f32 1.0, %v641_v48  ;;  %v708_v17 = vld [vmem:[%s1455_s7 + $0x20] sm:$0xff] }
 0x130   :  { %v760_v53 = vsel %vm616_vm2, %v744_v49, -1e+09  ;;  %v681_v54 = vmax.f32 %v665_v50, 0.0  ;;  %v673_v56 = vmax.f32 %v657_v51, 0.0 }
 0x131   :  { %777 = vst.msk [vmem:[%s1456_s8 + $0x40] sm:$0xff] %vm768_vm0, %v760_v53 }
 0x132   :  { %v697_v58 = vmin.f32 %v681_v54, 2.0  ;;  %v689_v61 = vmin.f32 %v673_v56, 2.0 }
 0x133   :  { %v581_v20 = vpop.xlane.xlu0 %580  ;;  %v597_v62 = vpop.xlane.xlu1 %596 }
 0x134   :  { %v729_v0 = vsub.f32 %v713_v55, %v697_v58  ;;  %v642_v1 = vmul.f32 %v626_v57, %v581_v20  ;;  %v721_v2 = vsub.f32 %v705_v59, %v689_v61  ;;  %v650_v3 = vmul.f32 %v634_v60, %v597_v62  ;;  %v583_v4 = vpop.xlane.xlu2 %582  ;;  %v716_v59 = vld [vmem:[%s1455_s7 + $0x60] sm:$0xff] }
 0x135   :  { %v643_v7 = vmul.f32 %v627_v63, %v583_v4  ;;  %vm610_vm5 = vcmp.gt.f32.partialorder %v581_v20, -5e+08  ;;  %vm618_vm6 = vcmp.gt.f32.partialorder %v597_v62, -5e+08  ;;  %vm611_vm7 = vcmp.gt.f32.partialorder %v583_v4, -5e+08 }
 0x136   :  { %v745_v5 = vadd.f32 0.5, %v729_v0  ;;  %v658_v6 = vsub.f32 1.0, %v642_v1  ;;  %v737_v8 = vadd.f32 0.5, %v721_v2  ;;  %v666_v9 = vsub.f32 1.0, %v650_v3  ;;  %v709_v63 = vld [vmem:[%s1455_s7 + $0x28] sm:$0xff]  ;;  %v630_v0 = vld [vmem:[%s1454_s2 + $0x30] sm:$0xff] }
 0x137   :  { %v659_v12 = vsub.f32 1.0, %v643_v7 }
 0x138   :  { %v761_v10 = vsel %vm617_vm3, %v745_v5, -1e+09  ;;  %v674_v11 = vmax.f32 %v658_v6, 0.0  ;;  %v753_v38 = vsel %vm609_vm4, %v737_v8, -1e+09  ;;  %v682_v14 = vmax.f32 %v666_v9, 0.0 }
 0x139   :  { %778 = vst.msk [vmem:[%s1456_s8 + $0x48] sm:$0xff] %vm768_vm0, %v761_v10  ;;  %v675_v18 = vmax.f32 %v659_v12, 0.0  ;;  %v638_v10 = vld [vmem:[%s1454_s2 + $0x70] sm:$0xff] }
 0x13a   :  { %770 = vst.msk [vmem:[%s1456_s8 + $0x8] sm:$0xff] %vm768_vm0, %v753_v38  ;;  %v690_v15 = vmin.f32 %v674_v11, 2.0  ;;  %v698_v19 = vmin.f32 %v682_v14, 2.0  ;;  %v710_v38 = vld [vmem:[%s1455_s7 + $0x30] sm:$0xff]  ;;  %v631_v14 = vld [vmem:[%s1454_s2 + $0x38] sm:$0xff] }
 0x13b   :  { %v691_v26 = vmin.f32 %v675_v18, 2.0 }
 0x13c   :  { %v722_v25 = vsub.f32 %v706_v13, %v690_v15  ;;  %v730_v52 = vsub.f32 %v714_v16, %v698_v19  ;;  %v599_v29 = vpop.xlane.xlu2 %598  ;;  %v585_v30 = vpop.xlane.xlu1 %584 }
 0x13d   :  { %v723_v23 = vsub.f32 %v707_v21, %v691_v26  ;;  %v651_v32 = vmul.f32 %v635_v22, %v599_v29  ;;  %v644_v27 = vmul.f32 %v628_v28, %v585_v30  ;;  %vm619_vm8 = vcmp.gt.f32.partialorder %v599_v29, -5e+08  ;;  %v639_v29 = vld [vmem:[%s1454_s2 + $0x78] sm:$0xff] }
 0x13e   :  { %v738_v31 = vadd.f32 0.5, %v722_v25  ;;  %v746_v24 = vadd.f32 0.5, %v730_v52  ;;  %vm612_vm9 = vcmp.gt.f32.partialorder %v585_v30, -5e+08  ;;  %v718_v52 = vld [vmem:[%s1455_s7 + $0x70] sm:$0xff] }
 0x13f   :  { %v739_v35 = vadd.f32 0.5, %v723_v23  ;;  %v667_v36 = vsub.f32 1.0, %v651_v32  ;;  %v660_v39 = vsub.f32 1.0, %v644_v27  ;;  %v711_v32 = vld [vmem:[%s1455_s7 + $0x38] sm:$0xff] }
 0x140   :  { %v754_v34 = vsel %vm610_vm5, %v738_v31, -1e+09  ;;  %v762_v37 = vsel %vm618_vm6, %v746_v24, -1e+09 }
 0x141   :  { %771 = vst.msk [vmem:[%s1456_s8 + $0x10] sm:$0xff] %vm768_vm0, %v754_v34  ;;  %v755_v40 = vsel %vm611_vm7, %v739_v35, -1e+09  ;;  %v683_v41 = vmax.f32 %v667_v36, 0.0  ;;  %v676_v43 = vmax.f32 %v660_v39, 0.0  ;;  %v637_v35 = vld [vmem:[%s1454_s2 + $0x68] sm:$0xff] }
 0x142   :  { %779 = vst.msk [vmem:[%s1456_s8 + $0x50] sm:$0xff] %vm768_vm0, %v762_v37 }
 0x143   :  { %772 = vst.msk [vmem:[%s1456_s8 + $0x18] sm:$0xff] %vm768_vm0, %v755_v40  ;;  %v601_v44 = vpop.xlane.xlu0 %600  ;;  %v699_v46 = vmin.f32 %v683_v41, 2.0  ;;  %v692_v48 = vmin.f32 %v676_v43, 2.0 }
 0x144   :  { %v652_v47 = vmul.f32 %v636_v33, %v601_v44  ;;  %v587_v49 = vpop.xlane.xlu2 %586  ;;  %vm620_vm10 = vcmp.gt.f32.partialorder %v601_v44, -5e+08 }
 0x145   :  { %v731_v50 = vsub.f32 %v715_v42, %v699_v46  ;;  %v645_v53 = vmul.f32 %v629_v45, %v587_v49  ;;  %v724_v54 = vsub.f32 %v708_v17, %v692_v48  ;;  %vm613_vm11 = vcmp.gt.f32.partialorder %v587_v49, -5e+08  ;;  %v719_v45 = vld [vmem:[%s1455_s7 + $0x78] sm:$0xff] }
 0x146   :  { %v668_v51 = vsub.f32 1.0, %v652_v47 }
 0x147   :  { %v747_v55 = vadd.f32 0.5, %v731_v50  ;;  %v661_v57 = vsub.f32 1.0, %v645_v53  ;;  %v740_v58 = vadd.f32 0.5, %v724_v54  ;;  %v717_v50 = vld [vmem:[%s1455_s7 + $0x68] sm:$0xff] }
 0x148   :  { %v684_v56 = vmax.f32 %v668_v51, 0.0 }
 0x149   :  { %v763_v60 = vsel %vm619_vm8, %v747_v55, -1e+09  ;;  %v677_v20 = vmax.f32 %v661_v57, 0.0  ;;  %v756_v62 = vsel %vm612_vm9, %v740_v58, -1e+09 }
 0x14a   :  { %v700_v61 = vmin.f32 %v684_v56, 2.0  ;;  %780 = vst.msk [vmem:[%s1456_s8 + $0x58] sm:$0xff] %vm768_vm0, %v763_v60 }
 0x14b   :  { %773 = vst.msk [vmem:[%s1456_s8 + $0x20] sm:$0xff] %vm768_vm0, %v756_v62  ;;  %v693_v2 = vmin.f32 %v677_v20, 2.0 }
 0x14c   :  { %v732_v1 = vsub.f32 %v716_v59, %v700_v61  ;;  %v589_v3 = vpop.xlane.xlu0 %588 }
 0x14d   :  { %v725_v5 = vsub.f32 %v709_v63, %v693_v2  ;;  %v646_v6 = vmul.f32 %v630_v0, %v589_v3  ;;  %vm614_vm12 = vcmp.gt.f32.partialorder %v589_v3, -5e+08 }
 0x14e   :  { %v748_v4 = vadd.f32 0.5, %v732_v1 }
 0x14f   :  { %v741_v8 = vadd.f32 0.5, %v725_v5  ;;  %v662_v9 = vsub.f32 1.0, %v646_v6 }
 0x150   :  { %v764_v7 = vsel %vm620_vm10, %v748_v4, -1e+09 }
 0x151   :  { %781 = vst.msk [vmem:[%s1456_s8 + $0x60] sm:$0xff] %vm768_vm0, %v764_v7  ;;  %v757_v11 = vsel %vm613_vm11, %v741_v8, -1e+09  ;;  %v678_v12 = vmax.f32 %v662_v9, 0.0 }
 0x152   :  { %774 = vst.msk [vmem:[%s1456_s8 + $0x28] sm:$0xff] %vm768_vm0, %v757_v11 }
 0x153   :  { %v605_v13 = vpop.xlane.xlu2 %604  ;;  %v694_v15 = vmin.f32 %v678_v12, 2.0 }
 0x154   :  { %v654_v16 = vmul.f32 %v638_v10, %v605_v13  ;;  %v591_v18 = vpop.xlane.xlu1 %590  ;;  %vm622_vm13 = vcmp.gt.f32.partialorder %v605_v13, -5e+08 }
 0x155   :  { %v726_v19 = vsub.f32 %v710_v38, %v694_v15  ;;  %v647_v22 = vmul.f32 %v631_v14, %v591_v18  ;;  %vm615_vm14 = vcmp.gt.f32.partialorder %v591_v18, -5e+08 }
 0x156   :  { %v670_v21 = vsub.f32 1.0, %v654_v16 }
 0x157   :  { %v742_v25 = vadd.f32 0.5, %v726_v19  ;;  %v663_v28 = vsub.f32 1.0, %v647_v22 }
 0x158   :  { %v686_v26 = vmax.f32 %v670_v21, 0.0 }
 0x159   :  { %v758_v30 = vsel %vm614_vm12, %v742_v25, -1e+09  ;;  %v679_v23 = vmax.f32 %v663_v28, 0.0 }
 0x15a   :  { %v702_v31 = vmin.f32 %v686_v26, 2.0  ;;  %775 = vst.msk [vmem:[%s1456_s8 + $0x30] sm:$0xff] %vm768_vm0, %v758_v30 }
 0x15b   :  { %v607_v24 = vpop.xlane.xlu0 %606  ;;  %v695_v33 = vmin.f32 %v679_v23, 2.0 }
 0x15c   :  { %v734_v27 = vsub.f32 %v718_v52, %v702_v31  ;;  %v655_v34 = vmul.f32 %v639_v29, %v607_v24  ;;  %v603_v36 = vpop.xlane.xlu1 %602  ;;  %vm623_vm15 = vcmp.gt.f32.partialorder %v607_v24, -5e+08 }
 0x15d   :  { %v727_v39 = vsub.f32 %v711_v32, %v695_v33  ;;  %v653_v41 = vmul.f32 %v637_v35, %v603_v36  ;;  %vm621_vm1 = vcmp.gt.f32.partialorder %v603_v36, -5e+08 }
 0x15e   :  { %v750_v37 = vadd.f32 0.5, %v734_v27  ;;  %v671_v40 = vsub.f32 1.0, %v655_v34 }
 0x15f   :  { %v743_v43 = vadd.f32 0.5, %v727_v39  ;;  %v669_v46 = vsub.f32 1.0, %v653_v41 }
 0x160   :  { %v766_v42 = vsel %vm622_vm13, %v750_v37, -1e+09  ;;  %v687_v44 = vmax.f32 %v671_v40, 0.0 }
 0x161   :  { %783 = vst.msk [vmem:[%s1456_s8 + $0x70] sm:$0xff] %vm768_vm0, %v766_v42  ;;  %v759_v17 = vsel %vm615_vm14, %v743_v43, -1e+09  ;;  %v685_v48 = vmax.f32 %v669_v46, 0.0 }
 0x162   :  { %v703_v47 = vmin.f32 %v687_v44, 2.0  ;;  %776 = vst.msk [vmem:[%s1456_s8 + $0x38] sm:$0xff] %vm768_vm0, %v759_v17 }
 0x163   :  { %v701_v51 = vmin.f32 %v685_v48, 2.0 }
 0x164   :  { %v735_v49 = vsub.f32 %v719_v45, %v703_v47 }
 0x165   :  { %v733_v54 = vsub.f32 %v717_v50, %v701_v51 }
 0x166   :  { %v751_v53 = vadd.f32 0.5, %v735_v49 }
 0x167   :  { %v749_v56 = vadd.f32 0.5, %v733_v54 }
 0x168   :  { %v767_v55 = vsel %vm623_vm15, %v751_v53, -1e+09 }
 0x169   :  { %784 = vst.msk [vmem:[%s1456_s8 + $0x78] sm:$0xff] %vm768_vm0, %v767_v55  ;;  %v765_v57 = vsel %vm621_vm1, %v749_v56, -1e+09 }
 0x16a   :  { %782 = vst.msk [vmem:[%s1456_s8 + $0x68] sm:$0xff] %vm768_vm0, %v765_v57 }

</bundles_post_ra>
